<compile_context>
chip_gen: v6e
topology: v6e:2x2x1
jax: 0.10.0
libtpu: 0.0.40
codegen_flags: <defaults>
</compile_context>

<pallas_src>
import math
import functools

import jax
import jax.numpy as jnp
import numpy as np
from jax.experimental import pallas as pl
from jax.experimental.pallas import tpu as pltpu


def _perceiver_attn_kernel(x_ref, lat_ref, g1_ref, b1_ref, g2_ref, b2_ref,
                           wq_ref, wkv_ref, wo_ref, o_ref,
                           kv_scr, acc_scr,
                           *, n1, n2, dim_head, eps):
    """Grid = (batch, head). One head of one batch element per grid step."""
    h = pl.program_id(1)
    cdt = kv_scr.dtype  # MXU compute dtype (bf16)

    # ---- once per batch element: LayerNorms (f32 stats) + zero accumulator.
    @pl.when(h == 0)
    def _init():
        def layernorm(t, gamma, beta):
            mu = jnp.mean(t, axis=-1, keepdims=True)
            var = jnp.mean((t - mu) * (t - mu), axis=-1, keepdims=True)
            return (t - mu) * jax.lax.rsqrt(var + eps) * gamma + beta

        x = x_ref[0].astype(jnp.float32)          # (N1, D)
        lat = lat_ref[0].astype(jnp.float32)      # (N2, D)
        # kv_input = concat(norm1(x), norm2(latents)) written directly into a
        # persistent VMEM scratch (no in-kernel concatenate / extra copy).
        kv_scr[pl.ds(0, n1), :] = layernorm(x, g1_ref[...], b1_ref[...]).astype(cdt)
        kv_scr[pl.ds(n1, n2), :] = layernorm(lat, g2_ref[...], b2_ref[...]).astype(cdt)
        acc_scr[...] = jnp.zeros_like(acc_scr)

    kv_in = kv_scr[...]                 # (N1+N2, D) bf16, persists across heads
    lat_n = kv_scr[pl.ds(n1, n2), :]    # (N2, D)    bf16 (normalized latents)

    # Per-head projections (bf16 MXU operands, f32 accumulation).
    # wq already carries the full 1/sqrt(dim_head) attention scale (folded in
    # the wrapper), so no per-element rescale of q or k is needed here.
    q = jnp.dot(lat_n, wq_ref[0], preferred_element_type=jnp.float32)    # (N2, dh)
    kv = jnp.dot(kv_in, wkv_ref[0], preferred_element_type=jnp.float32)  # (N1+N2, 2*dh)
    k = kv[:, :dim_head]
    v = kv[:, dim_head:]

    # Attention scores + f32 softmax (divide goes to the EUP via approx recip).
    s = jax.lax.dot_general(q.astype(cdt), k.astype(cdt),
                            dimension_numbers=(((1,), (1,)), ((), ())),
                            preferred_element_type=jnp.float32)          # (N2, N1+N2)
    s = s - jnp.max(s, axis=-1, keepdims=True)
    e = jnp.exp(s)
    p = e * pl.reciprocal(jnp.sum(e, axis=-1, keepdims=True), approx=True)

    pv = jnp.dot(p.astype(cdt), v.astype(cdt),
                 preferred_element_type=jnp.float32)                     # (N2, dh)

    # Fold this head's slice of the output projection into the f32 accumulator:
    #   out = sum_h (pv_h @ wo[h*dh:(h+1)*dh, :])
    acc_scr[...] += jnp.dot(pv.astype(cdt), wo_ref[0],
                            preferred_element_type=jnp.float32)          # (N2, D)

    @pl.when(h == pl.num_programs(1) - 1)
    def _finalize():
        o_ref[0] = acc_scr[...].astype(o_ref.dtype)


def perceiver_attention(x, latents, params, *, heads, dim_head, eps=1e-5,
                        compute_dtype=jnp.bfloat16):
    """x: (B, N1, D), latents: (B, N2, D) -> (B, N2, D)."""
    B, N1, D = x.shape
    _, N2, _ = latents.shape
    inner = heads * dim_head

    g1, b1, g2, b2, wq, wkv, wo = params
    assert wq.shape == (D, inner) and wkv.shape == (D, 2 * inner) and wo.shape == (inner, D)

    # Fold the full attention scale ((q*s) @ (k*s)^T == (q/sqrt(dh)) @ k^T) into
    # wq, cast weights to the MXU compute dtype and split them per head.
    wq_h = (wq * (dim_head ** -0.5)).astype(compute_dtype)
    wq_h = wq_h.reshape(D, heads, dim_head).transpose(1, 0, 2)             # (H, D, dh)
    wkv_h = wkv.astype(compute_dtype).reshape(D, 2, heads, dim_head)
    wkv_h = wkv_h.transpose(2, 0, 1, 3).reshape(heads, D, 2 * dim_head)    # (H, D, 2dh) [K_h | V_h]
    wo_h = wo.astype(compute_dtype).reshape(heads, dim_head, D)            # (H, dh, D)

    g1_, b1_, g2_, b2_ = (p.reshape(1, D).astype(jnp.float32)
                          for p in (g1, b1, g2, b2))

    kernel = functools.partial(_perceiver_attn_kernel, n1=N1, n2=N2,
                               dim_head=dim_head, eps=eps)

    const2d = pl.BlockSpec((1, D), lambda b, h: (0, 0))

    return pl.pallas_call(
        kernel,
        out_shape=jax.ShapeDtypeStruct((B, N2, D), latents.dtype),
        grid_spec=pltpu.PrefetchScalarGridSpec(
            num_scalar_prefetch=0,
            grid=(B, heads),
            in_specs=[
                pl.BlockSpec((1, N1, D), lambda b, h: (b, 0, 0)),            # x
                pl.BlockSpec((1, N2, D), lambda b, h: (b, 0, 0)),            # latents
                const2d, const2d, const2d, const2d,                          # LN gamma/beta
                pl.BlockSpec((1, D, dim_head), lambda b, h: (h, 0, 0)),      # wq (per head)
                pl.BlockSpec((1, D, 2 * dim_head), lambda b, h: (h, 0, 0)),  # wkv (per head)
                pl.BlockSpec((1, dim_head, D), lambda b, h: (h, 0, 0)),      # wo (per head)
            ],
            out_specs=pl.BlockSpec((1, N2, D), lambda b, h: (b, 0, 0)),
            scratch_shapes=[
                pltpu.VMEM((N1 + N2, D), compute_dtype),   # normed concat(x, latents)
                pltpu.VMEM((N2, D), jnp.float32),          # output accumulator
            ]),
        compiler_params=pltpu.CompilerParams(
            dimension_semantics=("parallel", "arbitrary"),
            vmem_limit_bytes=48 * 1024 * 1024),
    )(x, latents, g1_, b1_, g2_, b2_, wq_h, wkv_h, wo_h)


def make_params(key, dim, heads, dim_head):
    """Deterministic synthetic parameters matching PerceiverAttention.__init__."""
    inner = heads * dim_head
    ks = jax.random.split(key, 3)
    g1 = jnp.ones((dim,), jnp.float32)
    b1 = jnp.zeros((dim,), jnp.float32)
    g2 = jnp.ones((dim,), jnp.float32)
    b2 = jnp.zeros((dim,), jnp.float32)
    wq = jax.random.normal(ks[0], (dim, inner), jnp.float32) * 0.05
    wkv = jax.random.normal(ks[1], (dim, 2 * inner), jnp.float32) * 0.05   # [K | V] cols
    wo = jax.random.normal(ks[2], (inner, dim), jnp.float32) * 0.05
    return (g1, b1, g2, b2, wq, wkv, wo)


def reference(x, latents, params, *, heads, dim_head, eps=1e-5):
    """Pure-JAX f32 reference mirroring the PyTorch forward."""
    g1, b1, g2, b2, wq, wkv, wo = params
    inner = heads * dim_head

    def ln(t, g, b):
        mu = jnp.mean(t, axis=-1, keepdims=True)
        var = jnp.mean((t - mu) ** 2, axis=-1, keepdims=True)
        return (t - mu) / jnp.sqrt(var + eps) * g + b

    xn = ln(x, g1, b1)
    latn = ln(latents, g2, b2)
    bsz, l, _ = latn.shape
    q = latn @ wq
    kv_in = jnp.concatenate([xn, latn], axis=-2)
    kv = kv_in @ wkv
    k, v = kv[..., :inner], kv[..., inner:]

    def split_heads(t):
        b_, n, _ = t.shape
        return t.reshape(b_, n, heads, dim_head).transpose(0, 2, 1, 3)

    qh, kh, vh = split_heads(q), split_heads(k), split_heads(v)
    scale = 1.0 / math.sqrt(math.sqrt(dim_head))
    w = (qh * scale) @ jnp.swapaxes(kh * scale, -2, -1)
    w = jax.nn.softmax(w.astype(jnp.float32), axis=-1).astype(w.dtype)
    out = w @ vh
    out = out.transpose(0, 2, 1, 3).reshape(bsz, l, inner)
    return out @ wo


if __name__ == "__main__":
    B, N1, N2 = 2, 16, 8
    DIM, HEADS, DIM_HEAD = 128, 4, 32   # lane-dense D; inner = 128

    key = jax.random.PRNGKey(0)
    kx, kl, kp = jax.random.split(key, 3)
    x = jax.random.normal(kx, (B, N1, DIM), jnp.float32)
    latents = jax.random.normal(kl, (B, N2, DIM), jnp.float32)
    params = make_params(kp, DIM, HEADS, DIM_HEAD)

    out = perceiver_attention(x, latents, params, heads=HEADS, dim_head=DIM_HEAD)
    out = jax.block_until_ready(out)

    ref = reference(x, latents, params, heads=HEADS, dim_head=DIM_HEAD)
    # Kernel uses bf16 MXU operands with f32 accumulation (reference is f32),
    # so comparison uses a bf16-level tolerance.
    np.testing.assert_allclose(np.asarray(out), np.asarray(ref),
                               rtol=5e-2, atol=5e-2)
    print("KERNEL_OK")
</pallas_src>

<mosaic_0001>
module attributes {stable_mosaic.version = 11 : i64} {
  func.func @_perceiver_attn_kernel(%arg0: i32, %arg1: i32, %arg2: memref<1x16x128xf32, #tpu.memory_space<vmem>>, %arg3: memref<1x8x128xf32, #tpu.memory_space<vmem>>, %arg4: memref<1x128xf32, #tpu.memory_space<vmem>>, %arg5: memref<1x128xf32, #tpu.memory_space<vmem>>, %arg6: memref<1x128xf32, #tpu.memory_space<vmem>>, %arg7: memref<1x128xf32, #tpu.memory_space<vmem>>, %arg8: memref<1x128x32xbf16, #tpu.memory_space<vmem>>, %arg9: memref<1x128x64xbf16, #tpu.memory_space<vmem>>, %arg10: memref<1x32x128xbf16, #tpu.memory_space<vmem>>, %arg11: memref<1x8x128xf32, #tpu.memory_space<vmem>>, %arg12: memref<24x128xbf16, #tpu.memory_space<vmem>>, %arg13: memref<8x128xf32, #tpu.memory_space<vmem>>) attributes {dimension_semantics = [#tpu.dimension_semantics<parallel>, #tpu.dimension_semantics<arbitrary>], iteration_bounds = array<i64: 2, 4>, scalar_prefetch = 0 : i64, scratch_operands = 2 : i64, tpu.core_type = #tpu.core_type<tc>, window_params = [{transform_indices = @transform_0, window_bounds = array<i64: 1, 16, 128>}, {transform_indices = @transform_1, window_bounds = array<i64: 1, 8, 128>}, {pipeline_mode = #tpu.pipeline_mode<synchronous>, transform_indices = @transform_2, window_bounds = array<i64: 1, 128>}, {pipeline_mode = #tpu.pipeline_mode<synchronous>, transform_indices = @transform_3, window_bounds = array<i64: 1, 128>}, {pipeline_mode = #tpu.pipeline_mode<synchronous>, transform_indices = @transform_4, window_bounds = array<i64: 1, 128>}, {pipeline_mode = #tpu.pipeline_mode<synchronous>, transform_indices = @transform_5, window_bounds = array<i64: 1, 128>}, {transform_indices = @transform_6, window_bounds = array<i64: 1, 128, 32>}, {transform_indices = @transform_7, window_bounds = array<i64: 1, 128, 64>}, {transform_indices = @transform_8, window_bounds = array<i64: 1, 32, 128>}, {transform_indices = @transform_9, window_bounds = array<i64: 1, 8, 128>}]} {
    %c0_i32 = arith.constant 0 : i32
    %0 = arith.cmpi eq, %arg1, %c0_i32 : i32
    %1 = arith.extui %0 : i1 to i32
    %c0_i32_0 = arith.constant 0 : i32
    %2 = arith.cmpi ne, %1, %c0_i32_0 : i32
    scf.if %2 {
      %c0_23 = arith.constant 0 : index
      %c0_24 = arith.constant 0 : index
      %c0_25 = arith.constant 0 : index
      %39 = vector.load %arg2[%c0_23, %c0_24, %c0_25] : memref<1x16x128xf32, #tpu.memory_space<vmem>>, vector<1x16x128xf32>
      %40 = vector.shape_cast %39 : vector<1x16x128xf32> to vector<16x128xf32>
      %c0_26 = arith.constant 0 : index
      %c0_27 = arith.constant 0 : index
      %c0_28 = arith.constant 0 : index
      %41 = vector.load %arg3[%c0_26, %c0_27, %c0_28] : memref<1x8x128xf32, #tpu.memory_space<vmem>>, vector<1x8x128xf32>
      %42 = vector.shape_cast %41 : vector<1x8x128xf32> to vector<8x128xf32>
      %c0_29 = arith.constant 0 : index
      %c0_30 = arith.constant 0 : index
      %43 = vector.load %arg4[%c0_29, %c0_30] : memref<1x128xf32, #tpu.memory_space<vmem>>, vector<1x128xf32>
      %c0_31 = arith.constant 0 : index
      %c0_32 = arith.constant 0 : index
      %44 = vector.load %arg5[%c0_31, %c0_32] : memref<1x128xf32, #tpu.memory_space<vmem>>, vector<1x128xf32>
      %cst_33 = arith.constant dense<0.000000e+00> : vector<16xf32>
      %45 = vector.multi_reduction <add>, %40, %cst_33 [1] : vector<16x128xf32> to vector<16xf32>
      %46 = vector.shape_cast %45 : vector<16xf32> to vector<16x1xf32>
      %cst_34 = arith.constant 1.280000e+02 : f32
      %47 = vector.broadcast %cst_34 : f32 to vector<16x1xf32>
      %48 = arith.divf %46, %47 : vector<16x1xf32>
      %49 = vector.broadcast %48 : vector<16x1xf32> to vector<16x128xf32>
      %50 = arith.subf %40, %49 : vector<16x128xf32>
      %51 = vector.broadcast %48 : vector<16x1xf32> to vector<16x128xf32>
      %52 = arith.subf %40, %51 : vector<16x128xf32>
      %53 = arith.mulf %50, %52 : vector<16x128xf32>
      %cst_35 = arith.constant dense<0.000000e+00> : vector<16xf32>
      %54 = vector.multi_reduction <add>, %53, %cst_35 [1] : vector<16x128xf32> to vector<16xf32>
      %55 = vector.shape_cast %54 : vector<16xf32> to vector<16x1xf32>
      %cst_36 = arith.constant 1.280000e+02 : f32
      %56 = vector.broadcast %cst_36 : f32 to vector<16x1xf32>
      %57 = arith.divf %55, %56 : vector<16x1xf32>
      %58 = vector.broadcast %48 : vector<16x1xf32> to vector<16x128xf32>
      %59 = arith.subf %40, %58 : vector<16x128xf32>
      %cst_37 = arith.constant 9.99999974E-6 : f32
      %60 = vector.broadcast %cst_37 : f32 to vector<16x1xf32>
      %61 = arith.addf %57, %60 : vector<16x1xf32>
      %62 = math.rsqrt %61 : vector<16x1xf32>
      %63 = vector.broadcast %62 : vector<16x1xf32> to vector<16x128xf32>
      %64 = arith.mulf %59, %63 : vector<16x128xf32>
      %65 = vector.broadcast %43 : vector<1x128xf32> to vector<16x128xf32>
      %66 = arith.mulf %64, %65 : vector<16x128xf32>
      %67 = vector.broadcast %44 : vector<1x128xf32> to vector<16x128xf32>
      %68 = arith.addf %66, %67 : vector<16x128xf32>
      %69 = arith.truncf %68 : vector<16x128xf32> to vector<16x128xbf16>
      %c0_38 = arith.constant 0 : index
      %c0_39 = arith.constant 0 : index
      %70 = vector.load %arg12[%c0_38, %c0_39] : memref<24x128xbf16, #tpu.memory_space<vmem>>, vector<16x128xbf16>
      tpu.vector_store %arg12[%c0_38, %c0_39], %69 {strides = array<i32>} : memref<24x128xbf16, #tpu.memory_space<vmem>>, vector<16x128xbf16>,
      %c0_40 = arith.constant 0 : index
      %c0_41 = arith.constant 0 : index
      %71 = vector.load %arg6[%c0_40, %c0_41] : memref<1x128xf32, #tpu.memory_space<vmem>>, vector<1x128xf32>
      %c0_42 = arith.constant 0 : index
      %c0_43 = arith.constant 0 : index
      %72 = vector.load %arg7[%c0_42, %c0_43] : memref<1x128xf32, #tpu.memory_space<vmem>>, vector<1x128xf32>
      %cst_44 = arith.constant dense<0.000000e+00> : vector<8xf32>
      %73 = vector.multi_reduction <add>, %42, %cst_44 [1] : vector<8x128xf32> to vector<8xf32>
      %74 = vector.shape_cast %73 : vector<8xf32> to vector<8x1xf32>
      %cst_45 = arith.constant 1.280000e+02 : f32
      %75 = vector.broadcast %cst_45 : f32 to vector<8x1xf32>
      %76 = arith.divf %74, %75 : vector<8x1xf32>
      %77 = vector.broadcast %76 : vector<8x1xf32> to vector<8x128xf32>
      %78 = arith.subf %42, %77 : vector<8x128xf32>
      %79 = vector.broadcast %76 : vector<8x1xf32> to vector<8x128xf32>
      %80 = arith.subf %42, %79 : vector<8x128xf32>
      %81 = arith.mulf %78, %80 : vector<8x128xf32>
      %cst_46 = arith.constant dense<0.000000e+00> : vector<8xf32>
      %82 = vector.multi_reduction <add>, %81, %cst_46 [1] : vector<8x128xf32> to vector<8xf32>
      %83 = vector.shape_cast %82 : vector<8xf32> to vector<8x1xf32>
      %cst_47 = arith.constant 1.280000e+02 : f32
      %84 = vector.broadcast %cst_47 : f32 to vector<8x1xf32>
      %85 = arith.divf %83, %84 : vector<8x1xf32>
      %86 = vector.broadcast %76 : vector<8x1xf32> to vector<8x128xf32>
      %87 = arith.subf %42, %86 : vector<8x128xf32>
      %cst_48 = arith.constant 9.99999974E-6 : f32
      %88 = vector.broadcast %cst_48 : f32 to vector<8x1xf32>
      %89 = arith.addf %85, %88 : vector<8x1xf32>
      %90 = math.rsqrt %89 : vector<8x1xf32>
      %91 = vector.broadcast %90 : vector<8x1xf32> to vector<8x128xf32>
      %92 = arith.mulf %87, %91 : vector<8x128xf32>
      %93 = vector.broadcast %71 : vector<1x128xf32> to vector<8x128xf32>
      %94 = arith.mulf %92, %93 : vector<8x128xf32>
      %95 = vector.broadcast %72 : vector<1x128xf32> to vector<8x128xf32>
      %96 = arith.addf %94, %95 : vector<8x128xf32>
      %97 = arith.truncf %96 : vector<8x128xf32> to vector<8x128xbf16>
      %c16_49 = arith.constant 16 : index
      %c0_50 = arith.constant 0 : index
      %98 = vector.load %arg12[%c16_49, %c0_50] : memref<24x128xbf16, #tpu.memory_space<vmem>>, vector<8x128xbf16>
      tpu.vector_store %arg12[%c16_49, %c0_50], %97 {strides = array<i32>} : memref<24x128xbf16, #tpu.memory_space<vmem>>, vector<8x128xbf16>,
      %cst_51 = arith.constant 0.000000e+00 : f32
      %99 = vector.broadcast %cst_51 : f32 to vector<8x128xf32>
      %c0_52 = arith.constant 0 : index
      %c0_53 = arith.constant 0 : index
      %100 = vector.load %arg13[%c0_52, %c0_53] : memref<8x128xf32, #tpu.memory_space<vmem>>, vector<8x128xf32>
      tpu.vector_store %arg13[%c0_52, %c0_53], %99 {strides = array<i32>} : memref<8x128xf32, #tpu.memory_space<vmem>>, vector<8x128xf32>,
    } else {
    }
    %c0 = arith.constant 0 : index
    %c0_1 = arith.constant 0 : index
    %3 = vector.load %arg12[%c0, %c0_1] : memref<24x128xbf16, #tpu.memory_space<vmem>>, vector<24x128xbf16>
    %c16 = arith.constant 16 : index
    %c0_2 = arith.constant 0 : index
    %4 = vector.load %arg12[%c16, %c0_2] : memref<24x128xbf16, #tpu.memory_space<vmem>>, vector<8x128xbf16>
    %c0_3 = arith.constant 0 : index
    %c0_4 = arith.constant 0 : index
    %c0_5 = arith.constant 0 : index
    %5 = vector.load %arg8[%c0_3, %c0_4, %c0_5] : memref<1x128x32xbf16, #tpu.memory_space<vmem>>, vector<1x128x32xbf16>
    %6 = vector.shape_cast %5 : vector<1x128x32xbf16> to vector<128x32xbf16>
    %cst = arith.constant dense<0.000000e+00> : vector<8x32xf32>
    %7 = tpu.matmul %4, %6, %cst {dimension_numbers = #tpu.dot_dimension_numbers<[1], [0], [0], [1], [0, 0, 1, 1], [], []>} : vector<8x128xbf16>, vector<128x32xbf16>, vector<8x32xf32> -> vector<8x32xf32>
    %c0_6 = arith.constant 0 : index
    %c0_7 = arith.constant 0 : index
    %c0_8 = arith.constant 0 : index
    %8 = vector.load %arg9[%c0_6, %c0_7, %c0_8] : memref<1x128x64xbf16, #tpu.memory_space<vmem>>, vector<1x128x64xbf16>
    %9 = vector.shape_cast %8 : vector<1x128x64xbf16> to vector<128x64xbf16>
    %cst_9 = arith.constant dense<0.000000e+00> : vector<24x64xf32>
    %10 = tpu.matmul %3, %9, %cst_9 {dimension_numbers = #tpu.dot_dimension_numbers<[1], [0], [0], [1], [0, 0, 1, 1], [], []>} : vector<24x128xbf16>, vector<128x64xbf16>, vector<24x64xf32> -> vector<24x64xf32>
    %11 = vector.extract_strided_slice %10 {offsets = [0, 0], sizes = [24, 32], strides = [1, 1]} : vector<24x64xf32> to vector<24x32xf32>
    %12 = vector.extract_strided_slice %10 {offsets = [0, 32], sizes = [24, 32], strides = [1, 1]} : vector<24x64xf32> to vector<24x32xf32>
    %13 = arith.truncf %7 : vector<8x32xf32> to vector<8x32xbf16>
    %14 = arith.truncf %11 : vector<24x32xf32> to vector<24x32xbf16>
    %cst_10 = arith.constant dense<0.000000e+00> : vector<8x24xf32>
    %15 = tpu.matmul %13, %14, %cst_10 {dimension_numbers = #tpu.dot_dimension_numbers<[1], [1], [0], [0], [0, 0, 1, 0], [], []>} : vector<8x32xbf16>, vector<24x32xbf16>, vector<8x24xf32> -> vector<8x24xf32>
    %cst_11 = arith.constant dense<0xFF800000> : vector<8xf32>
    %16 = vector.multi_reduction <maximumf>, %15, %cst_11 [1] : vector<8x24xf32> to vector<8xf32>
    %17 = vector.shape_cast %16 : vector<8xf32> to vector<8x1xf32>
    %18 = vector.broadcast %17 : vector<8x1xf32> to vector<8x24xf32>
    %19 = arith.subf %15, %18 : vector<8x24xf32>
    %20 = math.exp %19 : vector<8x24xf32>
    %cst_12 = arith.constant dense<0.000000e+00> : vector<8xf32>
    %21 = vector.multi_reduction <add>, %20, %cst_12 [1] : vector<8x24xf32> to vector<8xf32>
    %22 = vector.shape_cast %21 : vector<8xf32> to vector<8x1xf32>
    %23 = tpu.reciprocal %22 {approx = true} : vector<8x1xf32> -> vector<8x1xf32>
    %24 = vector.broadcast %23 : vector<8x1xf32> to vector<8x24xf32>
    %25 = arith.mulf %20, %24 : vector<8x24xf32>
    %26 = arith.truncf %25 : vector<8x24xf32> to vector<8x24xbf16>
    %27 = arith.truncf %12 : vector<24x32xf32> to vector<24x32xbf16>
    %cst_13 = arith.constant dense<0.000000e+00> : vector<8x32xf32>
    %28 = tpu.matmul %26, %27, %cst_13 {dimension_numbers = #tpu.dot_dimension_numbers<[1], [0], [0], [1], [0, 0, 1, 1], [], []>} : vector<8x24xbf16>, vector<24x32xbf16>, vector<8x32xf32> -> vector<8x32xf32>
    %c0_14 = arith.constant 0 : index
    %c0_15 = arith.constant 0 : index
    %29 = vector.load %arg13[%c0_14, %c0_15] : memref<8x128xf32, #tpu.memory_space<vmem>>, vector<8x128xf32>
    %30 = arith.truncf %28 : vector<8x32xf32> to vector<8x32xbf16>
    %c0_16 = arith.constant 0 : index
    %c0_17 = arith.constant 0 : index
    %c0_18 = arith.constant 0 : index
    %31 = vector.load %arg10[%c0_16, %c0_17, %c0_18] : memref<1x32x128xbf16, #tpu.memory_space<vmem>>, vector<1x32x128xbf16>
    %32 = vector.shape_cast %31 : vector<1x32x128xbf16> to vector<32x128xbf16>
    %cst_19 = arith.constant dense<0.000000e+00> : vector<8x128xf32>
    %33 = tpu.matmul %30, %32, %cst_19 {dimension_numbers = #tpu.dot_dimension_numbers<[1], [0], [0], [1], [0, 0, 1, 1], [], []>} : vector<8x32xbf16>, vector<32x128xbf16>, vector<8x128xf32> -> vector<8x128xf32>
    %34 = arith.addf %29, %33 : vector<8x128xf32>
    %c0_20 = arith.constant 0 : index
    %c0_21 = arith.constant 0 : index
    %35 = vector.load %arg13[%c0_20, %c0_21] : memref<8x128xf32, #tpu.memory_space<vmem>>, vector<8x128xf32>
    tpu.vector_store %arg13[%c0_20, %c0_21], %34 {strides = array<i32>} : memref<8x128xf32, #tpu.memory_space<vmem>>, vector<8x128xf32>,
    %c3_i32 = arith.constant 3 : i32
    %36 = arith.cmpi eq, %arg1, %c3_i32 : i32
    %37 = arith.extui %36 : i1 to i32
    %c0_i32_22 = arith.constant 0 : i32
    %38 = arith.cmpi ne, %37, %c0_i32_22 : i32
    scf.if %38 {
      %c0_23 = arith.constant 0 : index
      %c0_24 = arith.constant 0 : index
      %39 = vector.load %arg13[%c0_23, %c0_24] : memref<8x128xf32, #tpu.memory_space<vmem>>, vector<8x128xf32>
      %c0_25 = arith.constant 0 : index
      %c0_26 = arith.constant 0 : index
      %c0_27 = arith.constant 0 : index
      %40 = vector.load %arg11[%c0_25, %c0_26, %c0_27] : memref<1x8x128xf32, #tpu.memory_space<vmem>>, vector<1x8x128xf32>
      %41 = vector.shape_cast %40 : vector<1x8x128xf32> to vector<8x128xf32>
      %42 = vector.shape_cast %39 : vector<8x128xf32> to vector<1x8x128xf32>
      tpu.vector_store %arg11[%c0_25, %c0_26, %c0_27], %42 {strides = array<i32>} : memref<1x8x128xf32, #tpu.memory_space<vmem>>, vector<1x8x128xf32>,
    } else {
    }
    return
  }
  func.func @transform_0(%arg0: i32, %arg1: i32) -> (i32, i32, i32) {
    %c0_i32 = arith.constant 0 : i32
    %c0_i32_0 = arith.constant 0 : i32
    %c0_i32_1 = arith.constant 0 : i32
    return %arg0, %c0_i32, %c0_i32_0 : i32, i32, i32
  }
  func.func @transform_1(%arg0: i32, %arg1: i32) -> (i32, i32, i32) {
    %c0_i32 = arith.constant 0 : i32
    %c0_i32_0 = arith.constant 0 : i32
    %c0_i32_1 = arith.constant 0 : i32
    return %arg0, %c0_i32, %c0_i32_0 : i32, i32, i32
  }
  func.func @transform_2(%arg0: i32, %arg1: i32) -> (i32, i32) {
    %c0_i32 = arith.constant 0 : i32
    %c0_i32_0 = arith.constant 0 : i32
    %c0_i32_1 = arith.constant 0 : i32
    return %c0_i32, %c0_i32_0 : i32, i32
  }
  func.func @transform_3(%arg0: i32, %arg1: i32) -> (i32, i32) {
    %c0_i32 = arith.constant 0 : i32
    %c0_i32_0 = arith.constant 0 : i32
    %c0_i32_1 = arith.constant 0 : i32
    return %c0_i32, %c0_i32_0 : i32, i32
  }
  func.func @transform_4(%arg0: i32, %arg1: i32) -> (i32, i32) {
    %c0_i32 = arith.constant 0 : i32
    %c0_i32_0 = arith.constant 0 : i32
    %c0_i32_1 = arith.constant 0 : i32
    return %c0_i32, %c0_i32_0 : i32, i32
  }
  func.func @transform_5(%arg0: i32, %arg1: i32) -> (i32, i32) {
    %c0_i32 = arith.constant 0 : i32
    %c0_i32_0 = arith.constant 0 : i32
    %c0_i32_1 = arith.constant 0 : i32
    return %c0_i32, %c0_i32_0 : i32, i32
  }
  func.func @transform_6(%arg0: i32, %arg1: i32) -> (i32, i32, i32) {
    %c0_i32 = arith.constant 0 : i32
    %c0_i32_0 = arith.constant 0 : i32
    %c0_i32_1 = arith.constant 0 : i32
    return %arg1, %c0_i32, %c0_i32_0 : i32, i32, i32
  }
  func.func @transform_7(%arg0: i32, %arg1: i32) -> (i32, i32, i32) {
    %c0_i32 = arith.constant 0 : i32
    %c0_i32_0 = arith.constant 0 : i32
    %c0_i32_1 = arith.constant 0 : i32
    return %arg1, %c0_i32, %c0_i32_0 : i32, i32, i32
  }
  func.func @transform_8(%arg0: i32, %arg1: i32) -> (i32, i32, i32) {
    %c0_i32 = arith.constant 0 : i32
    %c0_i32_0 = arith.constant 0 : i32
    %c0_i32_1 = arith.constant 0 : i32
    return %arg1, %c0_i32, %c0_i32_0 : i32, i32, i32
  }
  func.func @transform_9(%arg0: i32, %arg1: i32) -> (i32, i32, i32) {
    %c0_i32 = arith.constant 0 : i32
    %c0_i32_0 = arith.constant 0 : i32
    %c0_i32_1 = arith.constant 0 : i32
    return %arg0, %c0_i32, %c0_i32_0 : i32, i32, i32
  }
}

</mosaic_0001>

<bundles_post_ra>
// kernel: tpu_custom_call.1
= control target key start
LH: loop header
LB: loop body
LE: loop exit
PB: predicated region body
PF: predicated region fallthrough
CT: control target
= control target key end

     0   :  { %s1677_s0 = inlined_call_operand.vmem [shape: f32[2,16,128], index: 0, kind: input, shape index: {}]   ;;  %s1678_s1 = inlined_call_operand.vmem [shape: f32[2,8,128], index: 1, kind: input, shape index: {}]   ;;  %s1679_s2 = inlined_call_operand.vmem [shape: f32[1,128], index: 2, kind: input, shape index: {}]   ;;  %s1680_s3 = inlined_call_operand.vmem [shape: f32[1,128], index: 3, kind: input, shape index: {}]   ;;  %s1681_s4 = inlined_call_operand.vmem [shape: f32[1,128], index: 4, kind: input, shape index: {}]   ;;  %s1682_s5 = inlined_call_operand.vmem [shape: f32[1,128], index: 5, kind: input, shape index: {}]   ;;  %s1683_s6 = inlined_call_operand.vmem [shape: bf16[4,128,32], index: 6, kind: input, shape index: {}]   ;;  %s1684_s7 = inlined_call_operand.vmem [shape: bf16[4,128,64], index: 7, kind: input, shape index: {}]   ;;  %s1685_s8 = inlined_call_operand.vmem [shape: bf16[4,32,128], index: 8, kind: input, shape index: {}]   ;;  %s1686_s9 = inlined_call_operand.hbm [shape: f32[2,8,128], index: 9, kind: output, shape index: {}]  }
   0x1   :  { %1700 = sst [smem:[#allocation18_spill]] %s1686_s9 }
   0x2   :  { %14 = vsyncpa [#allocation5], 0 }
   0x3   :  { %16 = vsyncpa [#allocation5 + $0x1], 0  ;;  %s1466_s30 = smov 0   ;;  %s1468_s10 = smov 0  }
   0x4   :  { %s1470_s11 = smov 0   ;;  %s1472_s12 = smov 0  }
   0x5   :  { %s1474_s13 = smov 0   ;;  %s1476_s14 = smov 0  }
   0x6   :  { %s1478_s15 = smov 0   ;;  %s1480_s16 = smov 0  }
   0x7 LB: > { %1701 = sst [smem:[#allocation7_spill]] %s1381_s30  ;;  %s1059_s17 = sadd.s32 4294967295, %s1409_s16   ;;  %s1409_s16 = sphi %s1480_s16, %s22_s16   ;;  %s1405_s15 = sphi %s1478_s15, %s1727_s15   ;;  %s1401_s14 = sphi %s1476_s14, %s1726_s14   ;;  %s1397_s13 = sphi %s1474_s13, %s1725_s13   ;;  %s1393_s12 = sphi %s1472_s12, %s1724_s12   ;;  %s1389_s11 = sphi %s1470_s11, %s1723_s11   ;;  %s1385_s10 = sphi %s1468_s10, %s1722_s10   ;;  %s1381_s30 = sphi %s1466_s30, %s1721_s30  }
   0x8   : > { %1702 = sst [smem:[#allocation8_spill]] %s1385_s10  ;;  %s1060_s18 = sadd.s32 4294967294, %s1409_s16  }
   0x9   : > { %1703 = sst [smem:[#allocation9_spill]] %s1389_s11  ;;  %s31_s19 = sadd.s32 1, %s1401_s14 }
   0xa   : > { %1704 = sst [smem:[#allocation10_spill]] %s1401_s14  ;;  %p32_p0 = scmp.ge.s32.totalorder %s31_s19, 4 }
   0xb   : > { %1705 = sst [smem:[#allocation11_spill]] %s1405_s15  ;;  %s34_s20 = sadd.s32 1, %s1405_s15 }
   0xc   : > { %1706 = sst [smem:[#allocation12_spill]] %s1409_s16  ;;  %p265_p1 = scmp.ne.s32.totalorder %s1389_s11, %s1385_s10 }
   0xd   : > { %p266_p2 = scmp.eq.s32.totalorder %s1059_s17, 7  ;;  %s1729_s19 = smov (%p32_p0, %s31_s19), 0 }
   0xe   : > { %1707 = sst [smem:[#allocation13_spill]] %s1729_s19  ;;  %s1731_s20 = smov (!%p32_p0, %s34_s20), %s1405_s15 }
   0xf   : > { %p1515_p3 = por %p266_p2, %p265_p1  ;;  %p271_p4 = scmp.ne.s32.totalorder %s1385_s10, %s1381_s30 }
  0x10   : > { %p36_p5 = scmp.ge.s32.totalorder %s1731_s20, 2  ;;  %p272_p6 = scmp.eq.s32.totalorder %s1060_s18, 7 }
  0x11   : > { %s1708_s21 = scalar_select %p1515_p3, 1, 0 }
  0x12   : > { %p1063_p7 = scmp.ge.s32.totalorder %s1409_s16, 1  ;;  %p341_p8 = scmp.lt.s32.totalorder %s1409_s16, 9 }
  0x13   : > { %1709 = sst [smem:[#allocation14_spill]] %s1708_s21  ;;  %s1733_s20 = smov (%p36_p5, %s1731_s20), 0 }
  0x14   : > { %1710 = sst [smem:[#allocation15_spill]] %s1733_s20  ;;  %p1525_p9 = por %p272_p6, %p271_p4 }
  0x15   : > { %p342_p10 = pnand %p1063_p7, %p341_p8  ;;  %s252_s23 = ssub.s32 %s1405_s15, %s1733_s20 }
  0x16   : > { %s1711_s22 = scalar_select %p1525_p9, 1, 0 }
  0x17   : > { %s255_s24 = sadd.s32 1, %s1389_s11  ;;  %p253_p11 = scmp.eq.s32.totalorder %s252_s23, 0 }
  0x18   : > { %1712 = sst [smem:[#allocation16_spill]] %s1711_s22  ;;  %345 = sbr.rel (%p342_p10) target bundleno = 1531 (0x5fb), region = 56 }
  0x19   : > { %s1533_s25 = scalar_select %p253_p11, %s1389_s11, %s255_s24  }
  0x1a   : > { %s1693_s26 = sand.u32 (!%p342_p10), 1, %s1385_s10   ;;  %p396_p12 = scmp.lt.s32.totalorder (!%p342_p10), %s1397_s13, 1 }
  0x1b   : > { %1713 = sst [smem:[#allocation17_spill]] %s1533_s25  ;;  %s1539_s27 = sshll.u32 (!%p342_p10), %s1693_s26, 3 }
  0x1c   : > { %p405_p13 = scmp.lt.s32.totalorder (!%p342_p10), %s1393_s12, 3  ;;  %s395_s23 = scalar_lea.vmem (!%p342_p10), [#allocation4], %s1539_s27 }
  0x1d   : > { %s397_s28 = scalar_select %p396_p12, %s1397_s13, 1 }
  0x1e   : > { %s406_s29 = scalar_select %p405_p13, %s1393_s12, 3 }
  0x1f   : > { %s1109_s17 = sshll.u32 %s397_s28, 4  ;;  %s1067_s18 = sshll.u32 %s397_s28, 3 }
  0x20   : > { %s400_s20 = scalar_lea.vmem %s1677_s0, %s1109_s17  ;;  %s404_s14 = scalar_lea.vmem %s1678_s1, %s1067_s18 }
  0x21   : > { %s1110_s25 = sshll.u32 %s406_s29, 6  ;;  %s1112_s11 = sshll.u32 %s406_s29, 4 }
  0x22   : > { %s1553_s26 = scalar_lea.vmem %s1683_s6, %s1110_s25  ;;  %s1558_s21 = scalar_lea.vmem %s1684_s7, %s1110_s25 }
  0x23   : > { %s1563_s17 = scalar_lea.vmem %s1685_s8, %s1112_s11  ;;  %p1074_p0 = scmp.ne.s32.totalorder %s1393_s12, 0 }
  0x25   : > { %424 = sbr.rel (%p1074_p0) target bundleno = 357 (0x165), region = 60 }
  0x2a   : > { %v425_v0 = vld [vmem:[%s400_s20] sm:$0xff]  ;;  %v426_v2 = vld [vmem:[%s400_s20 + $0x8] sm:$0xff]  ;;  %v1411_v15 = vmov 0.0  }
  0x2b   : > { %v427_v1 = vld [vmem:[%s404_s14] sm:$0xff]  ;;  %430 = vadd.xlane.f32.xlu0 %v425_v0  ;;  %508 = vst [vmem:[#allocation3] sm:$0xff] %v1411_v15 }
  0x2c   : > { %481 = vadd.xlane.f32.xlu1 %v427_v1  ;;  %v1075_v27 = vld [vmem:[%s1679_s2] ss:$0 sm:$0xff] }
  0x2d   : > { %v1079_v29 = vld [vmem:[%s1681_s4] ss:$0 sm:$0xff] }
  0x2e   : > { %v1080_v33 = vld [vmem:[%s1682_s5] ss:$0 sm:$0xff] }
  0x2f   : > { %432 = vadd.xlane.f32.xlu0 %v426_v2  ;;  %v1076_v35 = vld [vmem:[%s1680_s3] ss:$0 sm:$0xff] }
  0xb4   : > { %v431_v3 = vpop.xlane.xlu0 %430 }
  0xb5   : > { %v482_v4 = vpop.xlane.xlu1 %481  ;;  %v435_v5 = vmul.f32 0.0078125, %v431_v3 }
  0xb6   : > { %v483_v6 = vmul.f32 0.0078125, %v482_v4 }
  0xb7   : > { %v437_v7 = vsub.f32 %v425_v0, %v435_v5 }
  0xb8   : > { %v484_v8 = vsub.f32 %v427_v1, %v483_v6  ;;  %v433_v9 = vpop.xlane.xlu0 %432 }
  0xb9   : > { %v436_v10 = vmul.f32 0.0078125, %v433_v9  ;;  %v439_v11 = vmul.f32 %v437_v7, %v437_v7 }
  0xba   : > { %v485_v13 = vmul.f32 %v484_v8, %v484_v8 }
  0xbb   : > { %v438_v12 = vsub.f32 %v426_v2, %v436_v10  ;;  %441 = vadd.xlane.f32.xlu1 %v439_v11 }
  0xbd   : > { %v440_v14 = vmul.f32 %v438_v12, %v438_v12 }
  0xbf   : > { %486 = vadd.xlane.f32.xlu1 %v485_v13  ;;  %443 = vadd.xlane.f32.xlu0 %v440_v14 }
 0x144   : > { %v442_v16 = vpop.xlane.xlu1 %441 }
 0x145   : > { %v445_v17 = vmul.f32 0.0078125, %v442_v16 }
 0x147   : > { %v447_v18 = vadd.f32 1e-05, %v445_v17 }
 0x148   : > { %v487_v19 = vpop.xlane.xlu1 %486  ;;  %v444_v20 = vpop.xlane.xlu0 %443 }
 0x149   : > { %1287 = vrsqrt.f32 %v447_v18  ;;  %v488_v21 = vmul.f32 0.0078125, %v487_v19  ;;  %v446_v22 = vmul.f32 0.0078125, %v444_v20 }
 0x14b   : > { %v489_v23 = vadd.f32 1e-05, %v488_v21  ;;  %v448_v24 = vadd.f32 1e-05, %v446_v22 }
 0x14d   : > { %1289 = vrsqrt.f32 %v489_v23 }
 0x14e   : > { %1291 = vrsqrt.f32 %v448_v24 }
 0x156   : > { %v1288_v25 = vpop.eup %1287 }
 0x157   : > { %v451_v26 = vmul.f32 %v1288_v25, %v437_v7 }
 0x159   : > { %v459_v32 = vmul.f32 %v1075_v27, %v451_v26 }
 0x15a   : > { %v1290_v28 = vpop.eup %1289 }
 0x15b   : > { %v1292_v30 = vpop.eup %1291  ;;  %v491_v31 = vmul.f32 %v1290_v28, %v484_v8  ;;  %v467_v39 = vadd.f32 %v1076_v35, %v459_v32 }
 0x15c   : > { %v452_v34 = vmul.f32 %v1292_v30, %v438_v12 }
 0x15d   : > { %v498_v36 = vmul.f32 %v1079_v29, %v491_v31 }
 0x15e   : > { %v460_v37 = vmul.f32 %v1075_v27, %v452_v34 }
 0x15f   : > { %v505_v38 = vadd.f32 %v1080_v33, %v498_v36 }
 0x160   : > { %v468_v40 = vadd.f32 %v1076_v35, %v460_v37 }
 0x161   : > { %v506_v41 = vpack.c.bf16 %v505_v38, %v505_v38 }
 0x162   : > { %v1118_v42 = vpack.c.bf16 %v468_v40, %v467_v39 }
 0x163   : > { %507 = vst [vmem:[#allocation2 + $0x8] sm:$0xf] %v506_v41 }
 0x164   : > { %1119 = vst [vmem:[#allocation2] sm:$0xff] %v1118_v42  }
 0x165 PF: > { %v1293_v43 = vld [vmem:[%s1558_s21 + $0x38] sm:$0xff]   ;;  %v1294_v44 = vld [vmem:[%s1558_s21 + $0x30] sm:$0xff]   ;;  %v1412_v45 = vmov 0.0   ;;  %vm1413_vm0 = vmmov 0   ;;  %v1295_v47 = vld [vmem:[%s1558_s21 + $0x28] sm:$0xff]   ;;  %vm741_vm1 = vcmask 261120  }
 0x166   : > { %1148 = vmatprep.subr.bf16.mxu0 %v1412_v45  ;;  %1168 = vmatprep.subr.bf16.mxu1 %v1293_v43  ;;  %v1296_v46 = vld [vmem:[%s1553_s26 + $0x38] sm:$0xff]   ;;  %v1298_v48 = vld [vmem:[%s1553_s26 + $0x30] sm:$0xff]   ;;  %v1297_v49 = vld [vmem:[%s1558_s21 + $0x20] sm:$0xff]   ;;  %s1414_s20 = smov 96   ;;  %vm814_vm2 = vcmask 1043456   ;;  %vm791_vm3 = vcmask 195584  }
 0x167   : > { %1164 = vmatprep.mubr.msk.bf16.mxu0 %vm1413_vm0, %v1412_v45  ;;  %1169 = vmatpush3.bf16.msra.mxu1 %v1293_v43  ;;  %v1300_v50 = vld [vmem:[%s1553_s26 + $0x28] sm:$0xff]   ;;  %v1299_v51 = vld [vmem:[%s1558_s21 + $0x18] sm:$0xff]   ;;  %v1302_v52 = vld [vmem:[%s1553_s26 + $0x20] sm:$0xff]   ;;  %p1104_p1 = scmp.ne.s32.totalorder %s1393_s12, 3 }
 0x168   : > { %1170 = vmatprep.subr.bf16.mxu1 %v1294_v44  ;;  %1149 = vmatpush3.bf16.msra.mxu0 %v1296_v46  ;;  %v1301_v54 = vld [vmem:[%s1558_s21 + $0x10] sm:$0xff]   ;;  %v1304_v55 = vld [vmem:[%s1553_s26 + $0x18] sm:$0xff]   ;;  %v1303_v56 = vld [vmem:[%s1558_s21 + $0x8] sm:$0xff]  }
 0x169   : > { %1150 = vmatprep.subr.bf16.mxu0 %v1412_v45  ;;  %v1306_v57 = vld [vmem:[%s1553_s26 + $0x10] sm:$0xff]   ;;  %v1305_v58 = vld [vmem:[%s1558_s21] sm:$0xff]   ;;  %v1309_v59 = vld [vmem:[%s1553_s26 + $0x8] sm:$0xff]  }
 0x16a   : > { %v511_v60 = vld [vmem:[#allocation2 + $0x8] sm:$0xf]  ;;  %v1310_v61 = vld [vmem:[%s1553_s26] sm:$0xff]   ;;  %v858_v36 = vld [vmem:[#allocation3] sm:$0xff] }
 0x16b   : > { %1171 = vmatpush3.bf16.msra.mxu1 %v1294_v44  ;;  %v1307_v53 = vld [vmem:[#allocation2] sm:$0xff]   ;;  %v1090_v62 = vcombine.low %v511_v60, %v511_v60  ;;  %v1311_v28 = vld [vmem:[%s1563_s17 + $0x8] sm:$0xff]  }
 0x16c   : > { %1172 = vmatprep.subr.bf16.mxu1 %v1295_v47  ;;  %1151 = vmatpush3.bf16.msra.mxu0 %v1298_v48  ;;  %v1312_v30 = vld [vmem:[%s1563_s17] sm:$0xff]  }
 0x16d   : > { %1152 = vmatprep.subr.bf16.mxu0 %v1412_v45  ;;  %1184 = vmatprep.mubr.bf16.mxu1 %v1307_v53 }
 0x16f   : > { %1173 = vmatpush3.bf16.msra.mxu1 %v1295_v47 }
 0x170   : > { %1174 = vmatprep.subr.bf16.mxu1 %v1297_v49  ;;  %1153 = vmatpush3.bf16.msra.mxu0 %v1300_v50 }
 0x171   : > { %1154 = vmatprep.subr.bf16.mxu0 %v1412_v45 }
 0x173   : > { %1175 = vmatpush3.bf16.msra.mxu1 %v1297_v49 }
 0x174   : > { %1176 = vmatprep.subr.bf16.mxu1 %v1299_v51  ;;  %1155 = vmatpush3.bf16.msra.mxu0 %v1302_v52 }
 0x175   : > { %1156 = vmatprep.subr.bf16.mxu0 %v1412_v45 }
 0x177   : > { %1177 = vmatpush3.bf16.msra.mxu1 %v1299_v51 }
 0x178   : > { %1178 = vmatprep.subr.bf16.mxu1 %v1301_v54  ;;  %1157 = vmatpush3.bf16.msra.mxu0 %v1304_v55 }
 0x179   : > { %1158 = vmatprep.subr.bf16.mxu0 %v1412_v45 }
 0x17b   : > { %1179 = vmatpush3.bf16.msra.mxu1 %v1301_v54 }
 0x17c   : > { %1180 = vmatprep.subr.bf16.mxu1 %v1303_v56  ;;  %1159 = vmatpush3.bf16.msra.mxu0 %v1306_v57 }
 0x17d   : > { %1160 = vmatprep.subr.bf16.mxu0 %v1412_v45 }
 0x17f   : > { %1181 = vmatpush3.bf16.msra.mxu1 %v1303_v56 }
 0x180   : > { %1182 = vmatprep.subr.bf16.mxu1 %v1305_v58  ;;  %1161 = vmatpush3.bf16.msra.mxu0 %v1309_v59 }
 0x181   : > { %1162 = vmatprep.subr.bf16.mxu0 %v1412_v45 }
 0x183   : > { %1183 = vmatpush3.bf16.msra.mxu1 %v1305_v58 }
 0x184   : > { %1196 = vmatprep.subr.bf16.mxu1 %v1412_v45  ;;  %1163 = vmatpush3.bf16.msra.mxu0 %v1310_v61 }
 0x185   : > { %1188 = vmatprep.subr.bf16.mxu0 %v1412_v45 }
 0x186   : > { %1185 = vmatmul.mubr.bf16.vlgmr.msra.gmra.mxu1 %v1090_v62 }
 0x187   : > { %1200 = vmatprep.mubr.msk.bf16.mxu1 %vm1413_vm0, %v1412_v45  ;;  %1165 = vmatmul.mubr.bf16.vlgmr.msra.gmra.mxu0 %v511_v60 }
 0x188   : > { %1192 = vmatprep.mubr.msk.bf16.mxu0 %vm1413_vm0, %v1412_v45 }
 0x246   : > { %v1186_v63 = vpop.f32.mrf.mxu1 }
 0x247   : > { %v740_v0 = vpack.c.bf16 %v1186_v63, %v1186_v63  ;;  %v610_v2 = vpop.f32.mrf.mxu0 }
 0x248   : > { %v724_v1 = vpop.f32.mrf.mxu1  ;;  %v738_v11 = vpack.c.bf16 %v610_v2, %v610_v2 }
 0x249   : > { %v749_v3 = vsel %vm741_vm1, %v740_v0, 0  ;;  %808 = vrot.lane.b32.xlu1 %v740_v0, %s1414_s20  ;;  %v1166_v5 = vpop.f32.mrf.mxu0 }
 0x24a   : > { %v1187_v4 = vpop.f32.mrf.mxu1  ;;  %1189 = vmatpush3.bf16.xpose.msra.mxu0 %v749_v3 }
 0x24b   : > { %1190 = vmatprep.subr.bf16.mxu0 %v1412_v45  ;;  %v613_v7 = vpop.f32.mrf.mxu0 }
 0x24c   : > { %v727_v6 = vpop.f32.mrf.mxu1 }
 0x24d   : > { %v739_v8 = vpack.c.bf16 %v727_v6, %v724_v1  ;;  %v1167_v9 = vpop.f32.mrf.mxu0 }
 0x24f   : > { %806 = vrot.lane.b32.xlu1 %v739_v8, %s1414_s20  ;;  %v746_v10 = vsel %vm741_vm1, %v739_v8, 0 }
 0x252   : > { %1191 = vmatpush3.bf16.xpose.msra.mxu0 %v746_v10 }
 0x259   : > { %1193 = vmatmul.mubr.msk.bf16.vlgmr.msra.gmra.mxu0 %vm741_vm1, %v738_v11 }
 0x2bb   : > { %v809_v12 = vpop.permute.xlu1 %808 }
 0x2bc   : > { %v816_v13 = vsel %vm814_vm2, %v809_v12, 0 }
 0x2bd   : > { %1197 = vmatpush3.bf16.msra.mxu1 %v816_v13 }
 0x2be   : > { %1198 = vmatprep.subr.bf16.mxu1 %v1412_v45 }
 0x2c1   : > { %v807_v14 = vpop.permute.xlu1 %806 }
 0x2c2   : > { %1199 = vmatpush3.bf16.msra.mxu1 %v807_v14 }
 0x2c3   : > { %1204 = vmatprep.subr.bf16.mxu1 %v1412_v45 }
 0x319   : > { %v785_v15 = vpop.f32.mrf.mxu0 }
 0x31a   : > { %v792_v16 = vsel %vm791_vm3, %v785_v15, -inf }
 0x31b   : > { %793 = vmax.xlane.f32.xlu0 %v792_v16  ;;  %v1194_v17 = vpop.f32.mrf.mxu0 }
 0x31d   : > { %v788_v18 = vpop.f32.mrf.mxu0 }
 0x31f   : > { %v1195_v19 = vpop.f32.mrf.mxu0 }
 0x3a4   : > { %v794_v20 = vpop.xlane.xlu0 %793 }
 0x3a5   : > { %v795_v21 = vsub.f32 %v785_v15, %v794_v20 }
 0x3a7   : > { %v796_v22 = vmul.f32 1.442695, %v795_v21 }
 0x3a9   : > { %1313 = vpow2.f32 %v796_v22 }
 0x3b6   : > { %v1314_v23 = vpop.eup %1313 }
 0x3b7   : > { %v798_v24 = vsel %vm791_vm3, %v1314_v23, 0.0 }
 0x3b8   : > { %799 = vadd.xlane.f32.xlu0 %v798_v24 }
 0x441   : > { %v800_v25 = vpop.xlane.xlu0 %799 }
 0x442   : > { %1315 = vrcp.f32 %v800_v25 }
 0x44f   : > { %v1316_v26 = vpop.eup %1315 }
 0x450   : > { %v802_v27 = vmul.f32 %v1316_v26, %v1314_v23 }
 0x452   : > { %v803_v29 = vpack.c.bf16 %v802_v27, %v802_v27 }
 0x454   : > { %1201 = vmatmul.mubr.msk.bf16.vlgmr.msra.gmra.mxu1 %vm791_vm3, %v803_v29 }
 0x455   : > { %1205 = vmatpush3.bf16.msra.mxu1 %v1311_v28  ;;  %1208 = vmatprep.mubr.msk.bf16.mxu1 %vm1413_vm0, %v1412_v45 }
 0x456   : > { %1206 = vmatprep.subr.bf16.mxu1 %v1412_v45 }
 0x459   : > { %1207 = vmatpush3.bf16.msra.mxu1 %v1312_v30 }
 0x514   : > { %v852_v31 = vpop.f32.mrf.mxu1 }
 0x515   : > { %v859_v32 = vpack.c.bf16 %v852_v31, %v852_v31 }
 0x516   : > { %v1202_v33 = vpop.f32.mrf.mxu1 }
 0x517   : > { %1209 = vmatmul.mubr.msk.bf16.vlgmr.msra.gmra.mxu1 %vm741_vm1, %v859_v32 }
 0x518   : > { %v855_v34 = vpop.f32.mrf.mxu1 }
 0x51a   : > { %v1203_v35 = vpop.f32.mrf.mxu1 }
 0x5d7   : > { %v913_v37 = vpop.f32.mrf.mxu1 }
 0x5d8   : > { %v919_v38 = vadd.f32 %v913_v37, %v858_v36 }
 0x5d9   : > { %v1210_v39 = vpop.f32.mrf.mxu1  ;;  %924 = sbr.rel (%p1104_p1) target bundleno = 1507 (0x5e3), region = 64 }
 0x5da   : > { %920 = vst [vmem:[#allocation3] sm:$0xff] %v919_v38 }
 0x5db   : > { %v916_v40 = vpop.f32.mrf.mxu1 }
 0x5dd   : > { %v1211_v41 = vpop.f32.mrf.mxu1 }
 0x5e1   : > { %v925_v42 = vld [vmem:[#allocation3] sm:$0xff] }
 0x5e2   : > { %926 = vst [vmem:[%s395_s23] sm:$0xff] %v925_v42 }
 0x5e3 PF: > { %s1714_s21 = sld [smem:[#allocation8_spill]]  ;;  %s1106_s25 = sshll.u32 %s1397_s13, 7 }
 0x5e4   : > { %s1716_s18 = sld [smem:[#allocation18_spill]]  ;;  %s941_s28 = sshll.u32 %s395_s23, 4  ;;  %s942_s28 = int_to_ptr.vmem [resolvable:$true] %s941_s28 }
 0x5e5   : > { %s1317_s9 = scalar_lea.vmem %s942_s28, 128  ;;  %s1415_s30 = smov [#allocation4]  }
 0x5e6   : > { %p1318_p2 = scmp.ne.s32.totalorder %s942_s28, %s1317_s9  ;;  %s1321_s10 = sshll.u32 %s1415_s30, 4  ;;  %s1322_s10 = int_to_ptr.vmem [resolvable:$false] %s1321_s10 }
 0x5e7   : > { %s1323_s11 = scalar_lea.vmem %s1322_s10, 256  ;;  %p1324_p6 = scmp.lt.s32.totalorder %s942_s28, %s1322_s10 }
 0x5e8   : > { %p1319_p4 = pnand %p1318_p2, %p1515_p3  ;;  %p1325_p7 = scmp.lt.s32.totalorder %s1323_s11, %s1317_s9 }
 0x5e9   : > { %s1717_s17 = sand.u32 1, %s1714_s21  }
 0x5ea   : > { %s939_s24 = scalar_lea.hbm %s1716_s18, %s1106_s25  ;;  %s928_s12 = scalar_lea.sflag [#allocation5], %s1717_s17 }
 0x5eb   : > { %p1320_p5 = pneg %p1319_p4  ;;  %p1326_p8 = por %p1325_p7, %p1324_p6 }
 0x5ed   : > { %p1327_p10 = pnand %p1326_p8, %p1320_p5 }
 0x5ef   : > { %1330 = shalt.err (!%p1327_p10)
}
 0x5f0   : > { %s1331_s13 = scalar_lea.hbm %s939_s24, 128  ;;  %s1335_s14 = scalar_lea.hbm %s1716_s18, 256 }
 0x5f1   : > { %p1332_p11 = scmp.ne.s32.totalorder %s939_s24, %s1331_s13  ;;  %p1336_p0 = scmp.lt.s32.totalorder %s939_s24, %s1716_s18 }
 0x5f2   : > { %p1337_p1 = scmp.lt.s32.totalorder %s1335_s14, %s1331_s13 }
 0x5f3   : > { %p1333_p12 = pnand %p1332_p11, %p1515_p3 }
 0x5f4   : > { %p1338_p2 = por %p1337_p1, %p1336_p0 }
 0x5f5   : > { %p1334_p13 = pneg %p1333_p12 }
 0x5f7   : > { %p1339_p4 = pnand %p1338_p2, %p1334_p13 }
 0x5f9   : > { %1342 = shalt.err (!%p1339_p4)
}
 0x5fa   : > { %1212 = dma.vmem_to_hbm [thread:$0]  (%p1515_p3), %s942_s28, 128, %s939_s24, %s928_s12  }
 0x5fb PF: > { %s1718_s19 = sld [smem:[#allocation12_spill]] }
 0x5fc   : > { %s1719_s20 = sld [smem:[#allocation7_spill]] }
 0x601   : > { %p1218_p5 = scmp.ge.s32.totalorder %s1718_s19, 2 }
 0x602   : > { %s953_s25 = sand.u32 1, %s1719_s20  }
 0x603   : > { %p1215_p6 = pnand %p1218_p5, %p1525_p9  ;;  %s954_s26 = scalar_lea.sflag [#allocation5], %s953_s25 }
 0x605   : > { %p1216_p7 = pneg %p1215_p6 }
 0x607   : > { %1376 = dma.done.wait (%p1216_p7), %s954_s26, 128  }
 0x608   : > { %1378 = vsyncadd (%p1216_p7), %s954_s26, 4294967168  ;;  %s22_s16 = sadd.s32 1, %s1718_s19   ;;  %s1721_s30 = sld [smem:[#allocation8_spill]] }
 0x609   : > { %p19_p8 = scmp.ge.s32.totalorder %s22_s16, 10   ;;  %s1722_s10 = sld [smem:[#allocation9_spill]] }
 0x60a   : > { %s1723_s11 = sld [smem:[#allocation17_spill]] }
 0x60b   : > { %s1724_s12 = sld [smem:[#allocation10_spill]]  ;;  %21 = sbr.rel (!%p19_p8) target bundleno = 7 (0x7), region = 111 }
 0x60c   : > { %s1725_s13 = sld [smem:[#allocation11_spill]] }
 0x60d   : > { %s1726_s14 = sld [smem:[#allocation13_spill]] }
 0x60e   : > { %s1727_s15 = sld [smem:[#allocation15_spill]] }
 0x610   :  { %959 = vsyncpa [#allocation5], 1 }
 0x611   :  { %961 = vsyncpa [#allocation5 + $0x1], 1 }

</bundles_post_ra>
